<compile_context>
chip_gen: v6e
topology: v6e:2x2x1
jax: 0.10.0
libtpu: 0.0.40
codegen_flags: <defaults>
</compile_context>

<pallas_src>
import math
import functools

import jax
import jax.numpy as jnp
from jax import lax
from jax.experimental import pallas as pl
from jax.experimental.pallas import tpu as pltpu


# ~8 MiB of x per grid step: per-step VMEM ≈ 2 x-bufs + 2 out-bufs + pe tile
# ≈ 34 MiB, under the 48 MiB limit below (v7x physical VMEM = 64 MiB,
# v5e/v6e = 128 MiB).  Large tiles keep the ~0.35 µs per-step overhead <~6%.
_TARGET_TILE_BYTES = 8 * 1024 * 1024
_VMEM_LIMIT_BYTES = 48 * 1024 * 1024


# ----------------------------------------------------------------------------
# Stateless in-kernel PRNG (pure jnp integer ops -> lowers everywhere)
# ----------------------------------------------------------------------------
def _random_u32(shape, seed, step):
    """Counter-based uniform uint32 bits keyed on (seed, grid step, row, col)."""
    r = lax.broadcasted_iota(jnp.int32, shape, 0).astype(jnp.uint32)
    c = lax.broadcasted_iota(jnp.int32, shape, 1).astype(jnp.uint32)
    x = (r * jnp.uint32(0x9E3779B1)) ^ (c * jnp.uint32(0x85EBCA77))
    x = x + seed.astype(jnp.uint32) * jnp.uint32(0xC2B2AE3D)
    x = x + step.astype(jnp.uint32) * jnp.uint32(0x27D4EB2F)
    # murmur3 fmix32 finalizer (good avalanche, 2 int muls + shifts/xors).
    x = x ^ (x >> 16)
    x = x * jnp.uint32(0x85EBCA6B)
    x = x ^ (x >> 13)
    x = x * jnp.uint32(0xC2B2AE35)
    x = x ^ (x >> 16)
    return x


# ----------------------------------------------------------------------------
# Kernel
# ----------------------------------------------------------------------------
def _pos_enc_kernel(seed_ref, x_ref, pe_ref, o_ref, *, p: float, training: bool,
                    grid_ndim: int):
    """One grid step: o = dropout(x_tile + pe_tile).

    x_ref : (TR, TC) VMEM tile of the flattened input
    pe_ref: (1,  TC) or (TR, TC) VMEM tile of pe (broadcasts over rows)
    o_ref : (TR, TC) VMEM
    seed_ref: (1,) SMEM scalar-prefetch (dropout base seed)
    """
    y = x_ref[...] + pe_ref[...]

    if training and p > 0.0:
        # Inverted dropout.  Each grid step gets an independent stream derived
        # from (seed, flat step id), so "parallel" grid semantics are safe.
        if grid_ndim == 2:
            step = pl.program_id(0) * pl.num_programs(1) + pl.program_id(1)
        else:
            step = pl.program_id(0)
        u = _random_u32(y.shape, seed_ref[0], step)
        thresh = jnp.uint32(min(int(p * 4294967296.0), 4294967295))
        scale = 0.0 if p >= 1.0 else 1.0 / (1.0 - p)
        # Mask-and-scale in x's dtype (no f32 upcast of y): one select + one mul.
        keep_scaled = jnp.where(
            u >= thresh,
            jnp.asarray(scale, dtype=y.dtype),
            jnp.asarray(0.0, dtype=y.dtype),
        )
        y = y * keep_scaled

    o_ref[...] = y.astype(o_ref.dtype)


# ----------------------------------------------------------------------------
# Parameter / buffer setup (matches the PyTorch __init__)
# ----------------------------------------------------------------------------
def make_positional_encoding_table(d_model: int, max_seq_len: int,
                                   dtype=jnp.float32) -> jnp.ndarray:
    """Build the pe buffer once, already in the model dtype (avoids a per-call cast)."""
    position = jnp.arange(max_seq_len, dtype=jnp.float32)[:, None]          # (L, 1)
    div_term = jnp.exp(
        jnp.arange(0, d_model, 2, dtype=jnp.float32) * (-math.log(10000.0) / d_model)
    )                                                                        # (D/2,)
    angles = position * div_term                                             # (L, D/2)
    pe = jnp.zeros((max_seq_len, d_model), dtype=jnp.float32)
    pe = pe.at[:, 0::2].set(jnp.sin(angles))
    pe = pe.at[:, 1::2].set(jnp.cos(angles))
    return pe.astype(dtype)                                                  # (L, D)


# ----------------------------------------------------------------------------
# Tile helpers
# ----------------------------------------------------------------------------
def _largest_mult8_divisor(n: int, cap: int) -> int:
    """Largest multiple-of-8 divisor of n that is <= cap (0 if none)."""
    best = 0
    d = 8
    hi = min(n, cap)
    while d <= hi:
        if n % d == 0:
            best = d
        d += 8
    return best


# ----------------------------------------------------------------------------
# Wrapper
# ----------------------------------------------------------------------------
def positional_encoding_forward(
    x: jnp.ndarray,            # [B, S, D]
    pe_table: jnp.ndarray,     # [max_seq_len, D]
    *,
    p: float = 0.1,
    training: bool = False,
    seed: int = 0,
    donate_x: bool = False,
) -> jnp.ndarray:
    B, S, D = x.shape
    assert pe_table.shape[0] >= S and pe_table.shape[1] == D
    itemsize = jnp.dtype(x.dtype).itemsize

    pe = pe_table[:S]
    if pe.dtype != x.dtype:
        # Prefer building the table in the model dtype at init; this cast is a
        # fallback and costs an extra HBM round-trip for pe.
        pe = pe.astype(x.dtype)

    seed_arr = jnp.array([seed], dtype=jnp.int32)

    # Layout B ("row-fold"): small batch with a lane-dense feature dim — fold
    # batch/sequence into the sublane axis so tiles fill >= 8 sublanes.
    use_rowfold = (B < 8) and (D >= 128) and (S % 8 == 0)

    if use_rowfold:
        R = B * S
        max_tr = max(8, _TARGET_TILE_BYTES // (D * itemsize))
        TR = _largest_mult8_divisor(S, min(S, max_tr))
        if TR == 0:
            TR = S  # unreachable given S % 8 == 0
        # v7x 2-TC balance: ensure >= 2 grid steps for non-trivial sizes.
        if (R // TR == 1 and R * D * itemsize > (1 << 20)
                and TR >= 16 and (TR // 2) % 8 == 0 and S % (TR // 2) == 0):
            TR //= 2
        n_pe_blocks = S // TR

        grid = (R // TR,)                       # exact: S % TR == 0
        xf = x.reshape(R, D)
        pe_in = pe                              # [S, D]
        if n_pe_blocks == 1:
            pe_map = lambda r, seed: (0, 0)     # fully VMEM-resident
        else:
            pe_map = lambda r, seed: (r % n_pe_blocks, 0)
        in_specs = [
            pl.BlockSpec((TR, D), lambda r, seed: (r, 0)),
            pl.BlockSpec((TR, D), pe_map),
        ]
        out_specs = pl.BlockSpec((TR, D), lambda r, seed: (r, 0))
        out_shape = jax.ShapeDtypeStruct((R, D), x.dtype)
        dims = ("parallel",)
        grid_ndim = 1
    else:
        # Layout A: flatten to a lane-dense [B, S*D] slab; pe is a [1, S*D] row
        # broadcast over the batch rows.
        SD = S * D
        if B <= 8:
            TB = B                              # full dim -> always legal
        else:
            # Prefer a multiple-of-8 divisor of B (no ragged row tail); cap so
            # the column tile can stay >= 128 lanes within the byte target.
            cap = max(8, _TARGET_TILE_BYTES // (128 * itemsize))
            TB = _largest_mult8_divisor(B, min(B, cap))
            if TB == 0:
                TB = max(8, min((B // 8) * 8, (cap // 8) * 8))
        # Adaptive column tile: as wide as the byte target allows, multiple of
        # 128 (unmasked lane-dense stores) or the full flattened row.
        max_cols = max(128, (_TARGET_TILE_BYTES // (TB * itemsize) // 128) * 128)
        TC = SD if SD <= max_cols else max_cols
        # v7x 2-TC balance: split the column axis if everything fit in one tile.
        if (pl.cdiv(SD, TC) * pl.cdiv(B, TB) == 1
                and B * SD * itemsize > (1 << 20) and SD >= 256):
            TC = max(128, ((SD // 2) // 128) * 128)

        # Columns OUTER so the pe block index is constant along the inner axis
        # and Pallas keeps it resident instead of re-DMAing it each step.
        grid = (pl.cdiv(SD, TC), pl.cdiv(B, TB))
        xf = x.reshape(B, SD)
        pe_in = pe.reshape(1, SD)
        in_specs = [
            pl.BlockSpec((TB, TC), lambda c, b, seed: (b, c)),
            pl.BlockSpec((1, TC), lambda c, b, seed: (0, c)),
        ]
        out_specs = pl.BlockSpec((TB, TC), lambda c, b, seed: (b, c))
        out_shape = jax.ShapeDtypeStruct((B, SD), x.dtype)
        dims = ("parallel", "parallel")
        grid_ndim = 2

    kernel = functools.partial(_pos_enc_kernel, p=p, training=training,
                               grid_ndim=grid_ndim)
    bytes_accessed = (2 * B * S * D + S * D) * itemsize   # read x + pe, write y

    out = pl.pallas_call(
        kernel,
        out_shape=out_shape,
        grid_spec=pltpu.PrefetchScalarGridSpec(
            num_scalar_prefetch=1,
            grid=grid,
            in_specs=in_specs,
            out_specs=out_specs,
        ),
        compiler_params=pltpu.CompilerParams(
            dimension_semantics=dims,
            vmem_limit_bytes=_VMEM_LIMIT_BYTES,
        ),
        cost_estimate=pl.CostEstimate(
            flops=B * S * D, transcendentals=0, bytes_accessed=bytes_accessed
        ),
        # If the caller donates x, alias it to the output (arg 0 is the seed).
        input_output_aliases=({1: 0} if donate_x else {}),
    )(seed_arr, xf, pe_in)

    return out.reshape(B, S, D)


# ----------------------------------------------------------------------------
# Main
# ----------------------------------------------------------------------------
if __name__ == "__main__":
    key = jax.random.PRNGKey(0)

    # ---- Case 1: layout A (B rows x (S*D) cols): eval + training ----
    B, S, D = 2, 8, 32
    max_seq_len = 64
    x = jax.random.normal(jax.random.fold_in(key, 0), (B, S, D), dtype=jnp.float32)
    pe_table = make_positional_encoding_table(D, max_seq_len, dtype=x.dtype)
    y_ref = x + pe_table[None, :S, :]

    y = jax.block_until_ready(
        positional_encoding_forward(x, pe_table, p=0.1, training=False))
    assert y.shape == (B, S, D)
    assert jnp.allclose(y, y_ref, atol=1e-6, rtol=1e-6), "eval-mode mismatch"

    p_drop = 0.5
    y_tr = jax.block_until_ready(
        positional_encoding_forward(x, pe_table, p=p_drop, training=True, seed=123))
    assert y_tr.shape == (B, S, D)
    assert bool(jnp.all(jnp.isfinite(y_tr)))
    scaled_ref = y_ref / (1.0 - p_drop)
    is_dropped = jnp.isclose(y_tr, 0.0, atol=1e-6)
    is_kept = jnp.isclose(y_tr, scaled_ref, atol=1e-5, rtol=1e-5)
    assert bool(jnp.all(is_dropped | is_kept)), "training values must be 0 or scaled x+pe"
    frac = float(jnp.mean(is_dropped.astype(jnp.float32)))
    assert 0.2 < frac < 0.8, f"drop fraction {frac} implausible for p=0.5"

    # ---- Case 2: layout B (row-fold: B < 8, D >= 128): eval + training ----
    B2, S2, D2 = 2, 16, 128
    x2 = jax.random.normal(jax.random.fold_in(key, 1), (B2, S2, D2), dtype=jnp.float32)
    pe_table2 = make_positional_encoding_table(D2, 32, dtype=x2.dtype)
    y2_ref = x2 + pe_table2[None, :S2, :]
    y2 = jax.block_until_ready(
        positional_encoding_forward(x2, pe_table2, training=False))
    assert jnp.allclose(y2, y2_ref, atol=1e-6, rtol=1e-6), "row-fold eval mismatch"
    y2_tr = jax.block_until_ready(
        positional_encoding_forward(x2, pe_table2, p=0.25, training=True, seed=7))
    ok2 = (jnp.isclose(y2_tr, 0.0, atol=1e-6)
           | jnp.isclose(y2_tr, y2_ref / 0.75, atol=1e-5, rtol=1e-5))
    assert bool(jnp.all(ok2)), "row-fold training values mismatch"

    # ---- Case 3: ragged row tail (B not a multiple of the row tile), eval ----
    B3, S3, D3 = 10, 8, 32
    x3 = jax.random.normal(jax.random.fold_in(key, 2), (B3, S3, D3), dtype=jnp.float32)
    y3_ref = x3 + pe_table[None, :S3, :]
    y3 = jax.block_until_ready(
        positional_encoding_forward(x3, pe_table, training=False))
    assert jnp.allclose(y3, y3_ref, atol=1e-6, rtol=1e-6), "ragged-tail eval mismatch"

    print("KERNEL_OK")
</pallas_src>

<mosaic_0001>
module attributes {stable_mosaic.version = 11 : i64} {
  func.func @_pos_enc_kernel(%arg0: i32, %arg1: i32, %arg2: memref<1xi32, #tpu.memory_space<smem>>, %arg3: memref<2x256xf32, #tpu.memory_space<vmem>>, %arg4: memref<1x256xf32, #tpu.memory_space<vmem>>, %arg5: memref<2x256xf32, #tpu.memory_space<vmem>>) attributes {dimension_semantics = [#tpu.dimension_semantics<parallel>, #tpu.dimension_semantics<parallel>], iteration_bounds = array<i64: 1, 1>, scalar_prefetch = 1 : i64, scratch_operands = 0 : i64, tpu.core_type = #tpu.core_type<tc>, window_params = [{transform_indices = @transform_0, window_bounds = array<i64: 2, 256>}, {transform_indices = @transform_1, window_bounds = array<i64: 1, 256>}, {transform_indices = @transform_2, window_bounds = array<i64: 2, 256>}]} {
    %c0 = arith.constant 0 : index
    %c0_0 = arith.constant 0 : index
    %0 = vector.load %arg3[%c0, %c0_0] : memref<2x256xf32, #tpu.memory_space<vmem>>, vector<2x256xf32>
    %c0_1 = arith.constant 0 : index
    %c0_2 = arith.constant 0 : index
    %1 = vector.load %arg4[%c0_1, %c0_2] : memref<1x256xf32, #tpu.memory_space<vmem>>, vector<1x256xf32>
    %2 = vector.broadcast %1 : vector<1x256xf32> to vector<2x256xf32>
    %3 = arith.addf %0, %2 : vector<2x256xf32>
    %c0_3 = arith.constant 0 : index
    %c0_4 = arith.constant 0 : index
    %4 = vector.load %arg5[%c0_3, %c0_4] : memref<2x256xf32, #tpu.memory_space<vmem>>, vector<2x256xf32>
    tpu.vector_store %arg5[%c0_3, %c0_4], %3 {strides = array<i32>} : memref<2x256xf32, #tpu.memory_space<vmem>>, vector<2x256xf32>,
    return
  }
  func.func @transform_0(%arg0: i32, %arg1: i32, %arg2: memref<1xi32, #tpu.memory_space<smem>>) -> (i32, i32) {
    %c0_i32 = arith.constant 0 : i32
    return %arg1, %arg0 : i32, i32
  }
  func.func @transform_1(%arg0: i32, %arg1: i32, %arg2: memref<1xi32, #tpu.memory_space<smem>>) -> (i32, i32) {
    %c0_i32 = arith.constant 0 : i32
    %c0_i32_0 = arith.constant 0 : i32
    return %c0_i32, %arg0 : i32, i32
  }
  func.func @transform_2(%arg0: i32, %arg1: i32, %arg2: memref<1xi32, #tpu.memory_space<smem>>) -> (i32, i32) {
    %c0_i32 = arith.constant 0 : i32
    return %arg1, %arg0 : i32, i32
  }
}

</mosaic_0001>

<bundles_post_ra>
// kernel: tpu_custom_call.1
= control target key start
LH: loop header
LB: loop body
LE: loop exit
PB: predicated region body
PF: predicated region fallthrough
CT: control target
= control target key end

     0   :  { %9 = vsyncpa [#allocation5], 0  ;;  %s142_s0 = inlined_call_operand.<no memory space> [shape: s32[1], index: 0, kind: input, shape index: {}]   ;;  %s143_s1 = inlined_call_operand.hbm [shape: f32[2,256], index: 1, kind: input, shape index: {}]   ;;  %s144_s2 = inlined_call_operand.vmem [shape: f32[1,256], index: 2, kind: input, shape index: {}]   ;;  %s145_s3 = inlined_call_operand.hbm [shape: f32[2,256], index: 3, kind: output, shape index: {}]  }
   0x1   :  { %10 = vsyncpa [#allocation6], 0  ;;  %s110_s12 = smov [#allocation4]  }
   0x2   :  { %s17_s13 = sshll.u32 %s110_s12, 4  ;;  %s18_s13 = int_to_ptr.vmem [resolvable:$true] %s17_s13 }
   0x3   :  { %s74_s14 = scalar_lea.vmem %s18_s13, 64  ;;  %p79_p1 = scmp.lt.s32.totalorder %s18_s13, %s18_s13 }
   0x4   :  { %p75_p0 = scmp.ne.s32.totalorder %s18_s13, %s74_s14  ;;  %p80_p2 = scmp.lt.s32.totalorder %s74_s14, %s74_s14 }
   0x6   :  { %p81_p3 = por %p80_p2, %p79_p1 }
   0x8   :  { %p82_p4 = pnand %p81_p3, %p75_p0 }
   0xa   :  { %85 = shalt.err (!%p82_p4)
}
   0xb   :  { %20 = dma.hbm_to_vmem [thread:$0]  %s143_s1, 64, %s18_s13, [#allocation5]  }
   0xc   :  { %106 = dma.done.wait [#allocation5], 64  }
   0xd   :  { %107 = vsyncadd [#allocation5], 4294967232  ;;  %v29_v0 = vlaneseq  ;;  %v111_v1 = vmov 1983009808   ;;  %v27_v7 = vld [vmem:[%s144_s2] sm:$0x3] }
   0xe   :  { %v39_v2 = vunpack.c.l.s4 %v111_v1  ;;  %v26_v12 = vld [vmem:[#allocation4] sm:$0xf]  ;;  %s112_s18 = smov [#allocation7]  }
   0xf   :  { %v30_v3 = vshrl.u32 %v29_v0, 7  ;;  %s54_s1 = sshll.u32 %s112_s18, 4  ;;  %s55_s1 = int_to_ptr.vmem [resolvable:$true] %s54_s1 }
  0x10   :  { %v40_v6 = vunpack.c.0.s8 %v39_v2  ;;  %s86_s19 = scalar_lea.vmem %s55_s1, 64  ;;  %p91_p6 = scmp.lt.s32.totalorder %s55_s1, %s55_s1 }
  0x11   :  { %v31_v4 = vsub.s32 0, %v30_v3  ;;  %v35_v5 = vsub.s32 1, %v30_v3  ;;  %p87_p5 = scmp.ne.s32.totalorder %s55_s1, %s86_s19  ;;  %p92_p7 = scmp.lt.s32.totalorder %s86_s19, %s86_s19 }
  0x12   :  { %v43_v10 = vsub.s32 %v40_v6, %v30_v3 }
  0x13   :  { %v32_v8 = vrot.slane %v27_v7, %v31_v4  ;;  %v36_v9 = vrot.slane %v27_v7, %v35_v5  ;;  %p93_p8 = por %p92_p7, %p91_p6 }
  0x15   :  { %v37_v11 = vcombine.low %v32_v8, %v36_v9  ;;  %p94_p9 = pnand %p93_p8, %p87_p5 }
  0x17   :  { %v44_v13 = vrot.slane %v37_v11, %v43_v10 }
  0x19   :  { %v46_v14 = vadd.f32 %v44_v13, %v26_v12 }
  0x1b   :  { %47 = vst [vmem:[#allocation7] sm:$0xf] %v46_v14 }
  0x1c   :  { %97 = shalt.err (!%p94_p9)
}
  0x1d   :  { %57 = dma.vmem_to_hbm [thread:$0]  %s55_s1, 64, %s145_s3, [#allocation6]  }
  0x1e   :  { %108 = dma.done.wait [#allocation6], 64  }
  0x1f   :  { %109 = vsyncadd [#allocation6], 4294967232 }
  0x20   :  { %61 = vsyncpa [#allocation5], 1 }
  0x21   :  { %62 = vsyncpa [#allocation6], 1 }

</bundles_post_ra>
